<compile_context>
chip_gen: v6e
topology: v6e:2x2x1
jax: 0.10.0
libtpu: 0.0.40
codegen_flags: <defaults>
</compile_context>

<pallas_src>
import functools

import jax
import jax.numpy as jnp
from jax.experimental import pallas as pl
from jax.experimental.pallas import tpu as pltpu


# ----------------------------------------------------------------------------
# Helpers: VMEM budget & tile planning
# ----------------------------------------------------------------------------

def _round_up(x, m):
    return ((x + m - 1) // m) * m


def _vmem_limit_bytes():
    """Per-generation VMEM limit: 75% of physical capacity (v6e/v5e: ~96 MiB,
    v7x: ~48 MiB).  Falls back to a v7x-safe value if the query is unavailable."""
    cap = 0
    try:
        cap = int(pltpu.get_tpu_info().vmem_capacity_bytes)
    except Exception:
        cap = 0
    if cap <= 0:
        cap = 64 * 1024 * 1024
    return (cap * 3) // 4


def _plan_tiles(T, U, H, V, mxu_bytes, out_bytes, vmem_limit):
    """Pick (tt, tu, tv) so everything resident in VMEM fits ~80% of the limit:
    double-buffered enc/dec/W2/b2/out blocks, the h scratch and the in-kernel
    f32 intermediates (tanh result, logits)."""
    f32 = 4
    budget = int(vmem_limit * 0.8)

    tt = min(128, _round_up(T, 8))
    tu = min(128, _round_up(U, 8))
    tv = min(2048, _round_up(V, 128))

    def footprint(a, b, c):
        return (
            2 * a * H * f32                # enc_proj tile  (double-buffered)
            + 2 * b * H * f32              # dec_proj tile  (double-buffered)
            + 2 * H * c * mxu_bytes        # W2 block       (double-buffered)
            + 2 * c * f32                  # b2 block       (double-buffered)
            + 2 * a * b * c * out_bytes    # output tile    (double-buffered)
            + a * b * H * mxu_bytes        # h scratch (single allocation)
            + a * b * H * f32              # f32 tanh intermediate
            + a * b * c * f32              # f32 logits intermediate
        )

    def half_sub(x):   # halve, keep a multiple of 8, floor 8
        return max(8, _round_up(x // 2, 8))

    def half_lane(x):  # halve, keep a multiple of 128, floor 128
        return max(128, (x // 2 // 128) * 128)

    while footprint(tt, tu, tv) > budget:
        cand = []
        if tt > 8:
            cand.append(("tt", footprint(half_sub(tt), tu, tv)))
        if tu > 8:
            cand.append(("tu", footprint(tt, half_sub(tu), tv)))
        if tv > 128:
            cand.append(("tv", footprint(tt, tu, half_lane(tv))))
        if not cand:
            break
        name = min(cand, key=lambda kv: kv[1])[0]
        if name == "tt":
            tt = half_sub(tt)
        elif name == "tu":
            tu = half_sub(tu)
        else:
            tv = half_lane(tv)
    return tt, tu, tv


# ----------------------------------------------------------------------------
# Fused joint-network kernel (broadcast-add + tanh + HxV matmul + bias)
# ----------------------------------------------------------------------------

def _joint_kernel(ep_ref, dp_ref, wo_ref, b2_ref, o_ref, h_ref):
    """One (b, t-tile, u-tile, v-tile) block.

    ep_ref: (1, TT, H) f32        dp_ref: (1, TU, H) f32 (already includes +b1)
    wo_ref: (H, TV)  mxu dtype    b2_ref: (1, TV) f32
    o_ref:  (1, TT, TU, TV)       h_ref:  (TT*TU, H) mxu-dtype VMEM scratch
    """
    # tanh(h) is identical for every V-tile of this (b, t, u) block: compute it
    # once (v == 0, v is the innermost grid axis) and cache it in VMEM scratch.
    @pl.when(pl.program_id(3) == 0)
    def _():
        h = jnp.tanh(ep_ref[0][:, None, :] + dp_ref[0][None, :, :])   # (TT,TU,H) f32
        tt, tu, hh = h.shape
        h_ref[...] = h.reshape(tt * tu, hh).astype(h_ref.dtype)

    # Output projection on the MXU, f32 accumulation, lane-dense V tile.
    logits = jnp.dot(h_ref[...], wo_ref[...],
                     preferred_element_type=jnp.float32) + b2_ref[...]   # (TT*TU, TV)
    tt, tu = o_ref.shape[1], o_ref.shape[2]
    o_ref[0] = logits.reshape(tt, tu, -1).astype(o_ref.dtype)


# ----------------------------------------------------------------------------
# Wrapper
# ----------------------------------------------------------------------------

def decoder_forward(params, enc_state, dec_state, *,
                    mxu_dtype=jnp.bfloat16, out_dtype=None):
    """Pallas forward of Decoder: (B,T,E) x (B,U,D) -> (B,T,U,vocab)."""
    B, T, E = enc_state.shape
    B2, U, D = dec_state.shape
    assert B == B2
    w1, b1, w2, b2 = params["w1"], params["b1"], params["w2"], params["b2"]
    H, in_dim = w1.shape
    V = w2.shape[0]
    assert in_dim == E + D, (in_dim, E, D)
    out_dtype = enc_state.dtype if out_dtype is None else out_dtype

    # --- First Linear, hoisted and split algebraically (computed once in XLA):
    #     concat(e, d) @ W1^T + b1 == e @ We + (d @ Wd + b1)
    hi = jax.lax.Precision.HIGHEST
    w_e = jnp.transpose(w1[:, :E])          # (E, H)
    w_d = jnp.transpose(w1[:, E:])          # (D, H)
    enc_proj = jnp.einsum("bte,eh->bth", enc_state, w_e, precision=hi)
    dec_proj = jnp.einsum("bud,dh->buh", dec_state, w_d, precision=hi) + b1
    enc_proj = enc_proj.astype(jnp.float32)   # f32 for the VPU/EUP path (v5e-safe)
    dec_proj = dec_proj.astype(jnp.float32)

    # --- Tile plan against the per-chip VMEM budget, then pad to tile multiples.
    vmem_limit = _vmem_limit_bytes()
    tt, tu, tv = _plan_tiles(T, U, H, V,
                             jnp.dtype(mxu_dtype).itemsize,
                             jnp.dtype(out_dtype).itemsize,
                             vmem_limit)
    t_pad = _round_up(T, tt)
    u_pad = _round_up(U, tu)
    v_pad = _round_up(V, tv)          # multiple of 128 -> lane-dense output

    if t_pad != T:
        enc_proj = jnp.pad(enc_proj, ((0, 0), (0, t_pad - T), (0, 0)))
    if u_pad != U:
        dec_proj = jnp.pad(dec_proj, ((0, 0), (0, u_pad - U), (0, 0)))

    w_o = jnp.transpose(w2).astype(mxu_dtype)     # (H, V), vocab on the lane dim
    b2r = b2.reshape(1, V).astype(jnp.float32)
    if v_pad != V:
        w_o = jnp.pad(w_o, ((0, 0), (0, v_pad - V)))
        b2r = jnp.pad(b2r, ((0, 0), (0, v_pad - V)))

    grid = (B, t_pad // tt, u_pad // tu, v_pad // tv)

    out = pl.pallas_call(
        _joint_kernel,
        out_shape=jax.ShapeDtypeStruct((B, t_pad, u_pad, v_pad), out_dtype),
        grid_spec=pltpu.PrefetchScalarGridSpec(
            num_scalar_prefetch=0,
            grid=grid,
            in_specs=[
                pl.BlockSpec((1, tt, H), lambda b, i, j, v: (b, i, 0)),
                pl.BlockSpec((1, tu, H), lambda b, i, j, v: (b, j, 0)),
                pl.BlockSpec((H, tv),    lambda b, i, j, v: (0, v)),
                pl.BlockSpec((1, tv),    lambda b, i, j, v: (0, v)),
            ],
            out_specs=pl.BlockSpec((1, tt, tu, tv),
                                   lambda b, i, j, v: (b, i, j, v)),
            scratch_shapes=[pltpu.VMEM((tt * tu, H), mxu_dtype)],
        ),
        compiler_params=pltpu.CompilerParams(
            dimension_semantics=("parallel", "parallel", "parallel", "arbitrary"),
            vmem_limit_bytes=vmem_limit,
        ),
    )(enc_proj, dec_proj, w_o, b2r)

    if (t_pad, u_pad, v_pad) != (T, U, V):
        out = out[:, :T, :U, :V]
    return out


# ----------------------------------------------------------------------------
# Pure-JAX reference (mirrors the PyTorch module literally) for verification
# ----------------------------------------------------------------------------

def decoder_reference(params, enc_state, dec_state):
    B, T, E = enc_state.shape
    _, U, D = dec_state.shape
    hi = jax.lax.Precision.HIGHEST
    enc_r = jnp.broadcast_to(enc_state[:, :, None, :], (B, T, U, E))
    dec_r = jnp.broadcast_to(dec_state[:, None, :, :], (B, T, U, D))
    cat = jnp.concatenate([enc_r, dec_r], axis=-1)            # (B, T, U, E+D)
    h = jnp.tanh(jnp.einsum("btuc,hc->btuh", cat, params["w1"],
                            precision=hi) + params["b1"])
    return jnp.einsum("btuh,vh->btuv", h, params["w2"],
                      precision=hi) + params["b2"]


# ----------------------------------------------------------------------------
# Deterministic parameter init (PyTorch nn.Linear default init shapes/ranges)
# ----------------------------------------------------------------------------

def _uniform(key, shape, fan_in):
    k = 1.0 / jnp.sqrt(jnp.float32(fan_in))
    return jax.random.uniform(key, shape, jnp.float32, -k, k)


if __name__ == "__main__":
    key = jax.random.PRNGKey(0)
    ks = jax.random.split(key, 6)

    # Small shapes consistent with the module (RNN-T joint network).
    B, T, U = 2, 16, 8
    ENC_DIM, DEC_DIM = 64, 64
    INPUT_DIM = ENC_DIM + DEC_DIM
    INNER_DIM = 64
    VOCAB = 48

    params = {
        "w1": _uniform(ks[0], (INNER_DIM, INPUT_DIM), INPUT_DIM),   # forward_layer
        "b1": _uniform(ks[1], (INNER_DIM,), INPUT_DIM),
        "w2": _uniform(ks[2], (VOCAB, INNER_DIM), INNER_DIM),       # proj
        "b2": _uniform(ks[3], (VOCAB,), INNER_DIM),
    }
    enc_state = jax.random.normal(ks[4], (B, T, ENC_DIM), jnp.float32)
    dec_state = jax.random.normal(ks[5], (B, U, DEC_DIM), jnp.float32)

    ref = decoder_reference(params, enc_state, dec_state)

    # Exact-semantics path (f32 MXU operands) — tight tolerance.
    fwd_f32 = jax.jit(functools.partial(decoder_forward, mxu_dtype=jnp.float32))
    out_f32 = fwd_f32(params, enc_state, dec_state)
    jax.block_until_ready(out_f32)
    assert out_f32.shape == (B, T, U, VOCAB), out_f32.shape
    err_f32 = float(jnp.max(jnp.abs(out_f32 - ref)))
    assert jnp.allclose(out_f32, ref, atol=1e-3, rtol=1e-3), err_f32

    # Default performance path (bf16 MXU operands, f32 accumulation).
    fwd = jax.jit(decoder_forward)
    out_bf = fwd(params, enc_state, dec_state)
    jax.block_until_ready(out_bf)
    assert out_bf.shape == (B, T, U, VOCAB), out_bf.shape
    err_bf = float(jnp.max(jnp.abs(out_bf - ref)))
    assert jnp.allclose(out_bf, ref, atol=5e-2, rtol=5e-2), err_bf

    print("KERNEL_OK")
</pallas_src>

<mosaic_0001>
module attributes {stable_mosaic.version = 11 : i64} {
  func.func @_joint_kernel(%arg0: i32, %arg1: i32, %arg2: i32, %arg3: i32, %arg4: memref<1x16x64xf32, #tpu.memory_space<vmem>>, %arg5: memref<1x8x64xf32, #tpu.memory_space<vmem>>, %arg6: memref<64x128xf32, #tpu.memory_space<vmem>>, %arg7: memref<1x128xf32, #tpu.memory_space<vmem>>, %arg8: memref<1x16x8x128xf32, #tpu.memory_space<vmem>>, %arg9: memref<128x64xf32, #tpu.memory_space<vmem>>) attributes {dimension_semantics = [#tpu.dimension_semantics<parallel>, #tpu.dimension_semantics<parallel>, #tpu.dimension_semantics<parallel>, #tpu.dimension_semantics<arbitrary>], iteration_bounds = array<i64: 2, 1, 1, 1>, scalar_prefetch = 0 : i64, scratch_operands = 1 : i64, tpu.core_type = #tpu.core_type<tc>, window_params = [{transform_indices = @transform_0, window_bounds = array<i64: 1, 16, 64>}, {transform_indices = @transform_1, window_bounds = array<i64: 1, 8, 64>}, {transform_indices = @transform_2, window_bounds = array<i64: 64, 128>}, {transform_indices = @transform_3, window_bounds = array<i64: 1, 128>}, {transform_indices = @transform_4, window_bounds = array<i64: 1, 16, 8, 128>}]} {
    %c0_i32 = arith.constant 0 : i32
    %0 = arith.cmpi eq, %arg3, %c0_i32 : i32
    %1 = arith.extui %0 : i1 to i32
    %c0_i32_0 = arith.constant 0 : i32
    %2 = arith.cmpi ne, %1, %c0_i32_0 : i32
    scf.if %2 {
      %c0_10 = arith.constant 0 : index
      %c0_11 = arith.constant 0 : index
      %c0_12 = arith.constant 0 : index
      %13 = vector.load %arg4[%c0_10, %c0_11, %c0_12] : memref<1x16x64xf32, #tpu.memory_space<vmem>>, vector<1x16x64xf32>
      %14 = vector.shape_cast %13 : vector<1x16x64xf32> to vector<16x64xf32>
      %15 = vector.shape_cast %14 : vector<16x64xf32> to vector<16x1x64xf32>
      %c0_13 = arith.constant 0 : index
      %c0_14 = arith.constant 0 : index
      %c0_15 = arith.constant 0 : index
      %16 = vector.load %arg5[%c0_13, %c0_14, %c0_15] : memref<1x8x64xf32, #tpu.memory_space<vmem>>, vector<1x8x64xf32>
      %17 = vector.shape_cast %16 : vector<1x8x64xf32> to vector<8x64xf32>
      %18 = vector.shape_cast %17 : vector<8x64xf32> to vector<1x8x64xf32>
      %19 = vector.broadcast %15 : vector<16x1x64xf32> to vector<16x8x64xf32>
      %20 = vector.broadcast %18 : vector<1x8x64xf32> to vector<16x8x64xf32>
      %21 = arith.addf %19, %20 : vector<16x8x64xf32>
      %22 = math.tanh %21 : vector<16x8x64xf32>
      %23 = vector.shape_cast %22 : vector<16x8x64xf32> to vector<128x64xf32>
      %c0_16 = arith.constant 0 : index
      %c0_17 = arith.constant 0 : index
      %24 = vector.load %arg9[%c0_16, %c0_17] : memref<128x64xf32, #tpu.memory_space<vmem>>, vector<128x64xf32>
      tpu.vector_store %arg9[%c0_16, %c0_17], %23 {strides = array<i32>} : memref<128x64xf32, #tpu.memory_space<vmem>>, vector<128x64xf32>,
    } else {
    }
    %c0 = arith.constant 0 : index
    %c0_1 = arith.constant 0 : index
    %3 = vector.load %arg9[%c0, %c0_1] : memref<128x64xf32, #tpu.memory_space<vmem>>, vector<128x64xf32>
    %c0_2 = arith.constant 0 : index
    %c0_3 = arith.constant 0 : index
    %4 = vector.load %arg6[%c0_2, %c0_3] : memref<64x128xf32, #tpu.memory_space<vmem>>, vector<64x128xf32>
    %cst = arith.constant dense<0.000000e+00> : vector<128x128xf32>
    %5 = tpu.matmul %3, %4, %cst {dimension_numbers = #tpu.dot_dimension_numbers<[1], [0], [0], [1], [0, 0, 1, 1], [], []>} : vector<128x64xf32>, vector<64x128xf32>, vector<128x128xf32> -> vector<128x128xf32>
    %c0_4 = arith.constant 0 : index
    %c0_5 = arith.constant 0 : index
    %6 = vector.load %arg7[%c0_4, %c0_5] : memref<1x128xf32, #tpu.memory_space<vmem>>, vector<1x128xf32>
    %7 = vector.broadcast %6 : vector<1x128xf32> to vector<128x128xf32>
    %8 = arith.addf %5, %7 : vector<128x128xf32>
    %9 = vector.shape_cast %8 : vector<128x128xf32> to vector<16x8x128xf32>
    %c0_6 = arith.constant 0 : index
    %c0_7 = arith.constant 0 : index
    %c0_8 = arith.constant 0 : index
    %c0_9 = arith.constant 0 : index
    %10 = vector.load %arg8[%c0_6, %c0_7, %c0_8, %c0_9] : memref<1x16x8x128xf32, #tpu.memory_space<vmem>>, vector<1x16x8x128xf32>
    %11 = vector.shape_cast %10 : vector<1x16x8x128xf32> to vector<16x8x128xf32>
    %12 = vector.shape_cast %9 : vector<16x8x128xf32> to vector<1x16x8x128xf32>
    tpu.vector_store %arg8[%c0_6, %c0_7, %c0_8, %c0_9], %12 {strides = array<i32>} : memref<1x16x8x128xf32, #tpu.memory_space<vmem>>, vector<1x16x8x128xf32>,
    return
  }
  func.func @transform_0(%arg0: i32, %arg1: i32, %arg2: i32, %arg3: i32) -> (i32, i32, i32) {
    %c0_i32 = arith.constant 0 : i32
    %c0_i32_0 = arith.constant 0 : i32
    return %arg0, %arg1, %c0_i32 : i32, i32, i32
  }
  func.func @transform_1(%arg0: i32, %arg1: i32, %arg2: i32, %arg3: i32) -> (i32, i32, i32) {
    %c0_i32 = arith.constant 0 : i32
    %c0_i32_0 = arith.constant 0 : i32
    return %arg0, %arg2, %c0_i32 : i32, i32, i32
  }
  func.func @transform_2(%arg0: i32, %arg1: i32, %arg2: i32, %arg3: i32) -> (i32, i32) {
    %c0_i32 = arith.constant 0 : i32
    %c0_i32_0 = arith.constant 0 : i32
    return %c0_i32, %arg3 : i32, i32
  }
  func.func @transform_3(%arg0: i32, %arg1: i32, %arg2: i32, %arg3: i32) -> (i32, i32) {
    %c0_i32 = arith.constant 0 : i32
    %c0_i32_0 = arith.constant 0 : i32
    return %c0_i32, %arg3 : i32, i32
  }
  func.func @transform_4(%arg0: i32, %arg1: i32, %arg2: i32, %arg3: i32) -> (i32, i32, i32, i32) {
    %c0_i32 = arith.constant 0 : i32
    return %arg0, %arg1, %arg2, %arg3 : i32, i32, i32, i32
  }
}

</mosaic_0001>

<bundles_post_ra>
// kernel: decoder_forward.1
= control target key start
LH: loop header
LB: loop body
LE: loop exit
PB: predicated region body
PF: predicated region fallthrough
CT: control target
= control target key end

     0   :  { %9 = vsyncpa [#allocation4], 0  ;;  %s1491_s0 = inlined_call_operand.vmem [shape: f32[2,16,64], index: 0, kind: input, shape index: {}]   ;;  %s1492_s1 = inlined_call_operand.vmem [shape: f32[2,8,64], index: 1, kind: input, shape index: {}]   ;;  %s1493_s2 = inlined_call_operand.vmem [shape: f32[64,128], index: 2, kind: input, shape index: {}]   ;;  %s1494_s3 = inlined_call_operand.vmem [shape: f32[1,128], index: 3, kind: input, shape index: {}]   ;;  %s1495_s4 = inlined_call_operand.hbm [shape: f32[2,16,8,128], index: 4, kind: output, shape index: {}]  }
   0x1   :  { %11 = vsyncpa [#allocation4 + $0x1], 0  ;;  %s1242_s15 = smov 0   ;;  %s1244_s16 = smov 0  }
   0x2   :  { %s1246_s17 = smov 0   ;;  %s1248_s18 = smov 0  }
   0x3   :  { %s1250_s19 = smov 0   ;;  %s1252_s20 = smov 0  }
   0x4 LB: > { %s928_s21 = sadd.s32 4294967295, %s1211_s20   ;;  %s929_s22 = sadd.s32 4294967294, %s1211_s20   ;;  %s1211_s20 = sphi %s1252_s20, %s17_s20   ;;  %s1207_s19 = sphi %s1250_s19, %s1502_s19   ;;  %s1203_s18 = sphi %s1248_s18, %s1501_s18   ;;  %s1199_s17 = sphi %s1246_s17, %s1500_s17   ;;  %s1195_s16 = sphi %s1244_s16, %s1499_s16   ;;  %s1191_s15 = sphi %s1242_s15, %s1498_s15  }
   0x5   : > { %s43_s23 = sadd.s32 1, %s1207_s19  ;;  %s164_s24 = sadd.s32 1, %s1199_s17 }
   0x6   : > { %p45_p0 = scmp.ge.s32.totalorder %s43_s23, 2  ;;  %p174_p1 = scmp.ne.s32.totalorder %s1199_s17, %s1195_s16 }
   0x7   : > { %p175_p2 = scmp.eq.s32.totalorder %s928_s21, 1  ;;  %p180_p3 = scmp.ne.s32.totalorder %s1195_s16, %s1191_s15 }
   0x8   : > { %s1504_s23 = smov (%p45_p0, %s43_s23), 0  ;;  %p181_p5 = scmp.eq.s32.totalorder %s929_s22, 1 }
   0x9   : > { %p1282_p4 = por %p175_p2, %p174_p1  ;;  %s155_s26 = ssub.s32 %s1207_s19, %s1504_s23 }
   0xa   : > { %p934_p6 = scmp.ge.s32.totalorder %s1211_s20, 1  ;;  %p162_p7 = scmp.eq.s32.totalorder %s155_s26, 0 }
   0xb   : > { %p1289_p8 = por %p181_p5, %p180_p3  ;;  %p235_p9 = scmp.lt.s32.totalorder %s1211_s20, 3 }
   0xc   : > { %s1295_s28 = scalar_select %p162_p7, %s1199_s17, %s164_s24  }
   0xd   : > { %p236_p10 = pnand %p934_p6, %p235_p9 }
   0xe   : > { %p280_p11 = scmp.lt.s32.totalorder (!%p236_p10), %s1203_s18, 1  ;;  %s962_s24 = sshll.u32 (!%p236_p10), %s1203_s18, 11 }
   0xf   : > { %239 = sbr.rel (%p236_p10) target bundleno = 283 (0x11b), region = 36  ;;  %s1214_s7 = smov (!%p236_p10), [#allocation3]  }
  0x10   : > { %s1139_s8 = sshll.u32 (!%p236_p10), %s1214_s7, 4  ;;  %s1140_s8 = int_to_ptr.vmem [resolvable:$false] %s1139_s8 }
  0x14   : > { %v563_v0 = vld [vmem:[%s1493_s2 + $0x38] sm:$0xff]  ;;  %v562_v1 = vld [vmem:[%s1493_s2 + $0x30] sm:$0xff]  ;;  %v316_v2 = vlaneseq  ;;  %v1213_v3 = vmov 1966171168   ;;  %v561_v5 = vld [vmem:[%s1493_s2 + $0x28] sm:$0xff]  ;;  %s281_s9 = scalar_select %p280_p11, %s1203_s18, 1 }
  0x15   : > { %987 = vmatprep.subr.mxu0 %v563_v0  ;;  %1027 = vmatprep.subr.mxu1 %v563_v0  ;;  %v314_v4 = vunpack.c.l.s4 %v1213_v3  ;;  %v560_v8 = vld [vmem:[%s1493_s2 + $0x20] sm:$0xff]  ;;  %v559_v10 = vld [vmem:[%s1493_s2 + $0x18] sm:$0xff]  ;;  %v558_v17 = vld [vmem:[%s1493_s2 + $0x10] sm:$0xff]  ;;  %vm523_vm0 = vcmask 523264  }
  0x16   : > { %988 = vmatpush3.msra.mxu0 %v563_v0  ;;  %1035 = vmatpush3.msra.mxu1 %v563_v0  ;;  %v317_v6 = vshrl.u32 %v316_v2, 7  ;;  %s961_s12 = sshll.u32 %s281_s9, 4  ;;  %s938_s13 = sshll.u32 %s281_s9, 3  ;;  %v557_v22 = vld [vmem:[%s1493_s2 + $0x8] sm:$0xff]  ;;  %v556_v30 = vld [vmem:[%s1493_s2] sm:$0xff] }
  0x17   : > { %989 = vmatprep.subr.mxu0 %v562_v1  ;;  %1028 = vmatprep.subr.mxu1 %v562_v1  ;;  %v315_v7 = vunpack.c.0.s8 %v314_v4  ;;  %s287_s22 = scalar_lea.vmem %s1491_s0, %s961_s12  ;;  %s295_s5 = scalar_lea.vmem %s1492_s1, %s938_s13 }
  0x18   : > { %990 = vmatpush3.msra.mxu0 %v562_v1  ;;  %1036 = vmatpush3.msra.mxu1 %v562_v1  ;;  %v308_v11 = vld [vmem:[%s287_s22] sm:$0xff]  ;;  %v309_v12 = vld [vmem:[%s287_s22 + $0x8] sm:$0xff]  ;;  %v1323_v15 = vsub.s32 0, %v317_v6  ;;  %s276_s12 = sand.u32 1, %s1195_s16   ;;  %s1141_s9 = scalar_lea.vmem %s1140_s8, 4096 }
  0x19   : > { %991 = vmatprep.subr.mxu0 %v561_v5  ;;  %1029 = vmatprep.subr.mxu1 %v561_v5  ;;  %v1314_v9 = vsub.s32 %v315_v7, %v317_v6  ;;  %v312_v13 = vcombine.high %v308_v11, %v308_v11  ;;  %v361_v16 = vcombine.high %v309_v12, %v309_v12  ;;  %v1334_v23 = vld [vmem:[%s295_s5] sm:$0xff]  ;;  %s935_s13 = sshll.u32 %s276_s12, 7  ;;  %s1437_s5 = scalar_lea.hbm %s1495_s4, %s962_s24 }
  0x1a   : > { %992 = vmatpush3.msra.mxu0 %v561_v5  ;;  %1037 = vmatpush3.msra.mxu1 %v561_v5  ;;  %s1417_s22 = scalar_lea.vmem [#allocation3], %s935_s13  ;;  %s1446_s18 = scalar_lea.sflag [#allocation4], %s276_s12 }
  0x1b   : > { %993 = vmatprep.subr.mxu0 %v560_v8  ;;  %1030 = vmatprep.subr.mxu1 %v560_v8  ;;  %v319_v14 = vrot.slane %v308_v11, %v1314_v9  ;;  %v368_v18 = vrot.slane %v309_v12, %v1314_v9  ;;  %v326_v21 = vrot.slane %v312_v13, %v1314_v9  ;;  %s799_s26 = sshll.u32 %s1417_s22, 4  ;;  %s1439_s26 = int_to_ptr.vmem [resolvable:$true] %s799_s26 }
  0x1c   : > { %994 = vmatpush3.msra.mxu0 %v560_v8  ;;  %1038 = vmatpush3.msra.mxu1 %v560_v8  ;;  %v375_v26 = vrot.slane %v361_v16, %v1314_v9  ;;  %s1135_s6 = scalar_lea.vmem %s1439_s26, 2048  ;;  %p1142_p1 = scmp.lt.s32.totalorder %s1439_s26, %s1140_s8 }
  0x1d   : > { %995 = vmatprep.subr.mxu0 %v559_v10  ;;  %1031 = vmatprep.subr.mxu1 %v559_v10  ;;  %v327_v19 = vcombine.high %v319_v14, %v319_v14  ;;  %v335_v20 = vrot.slane %v319_v14, %v1314_v9  ;;  %v376_v24 = vcombine.high %v368_v18, %v368_v18  ;;  %p1136_p12 = scmp.ne.s32.totalorder %s1439_s26, %s1135_s6  ;;  %p1143_p2 = scmp.lt.s32.totalorder %s1141_s9, %s1135_s6 }
  0x1e   : > { %996 = vmatpush3.msra.mxu0 %v559_v10  ;;  %1039 = vmatpush3.msra.mxu1 %v559_v10  ;;  %v384_v25 = vrot.slane %v368_v18, %v1314_v9  ;;  %v342_v47 = vrot.slane %v326_v21, %v1314_v9  ;;  %v391_v48 = vrot.slane %v375_v26, %v1314_v9 }
  0x1f   : > { %997 = vmatprep.subr.mxu0 %v558_v17  ;;  %1032 = vmatprep.subr.mxu1 %v558_v17  ;;  %v357_v27 = vcombine.high %v335_v20, %v335_v20  ;;  %v414_v28 = vrot.slane %v335_v20, %v1323_v15  ;;  %v349_v29 = vrot.slane %v327_v19, %v1314_v9  ;;  %p1137_p13 = pnand %p1136_p12, %p1282_p4  ;;  %p1144_p3 = por %p1143_p2, %p1142_p1 }
  0x20   : > { %998 = vmatpush3.msra.mxu0 %v558_v17  ;;  %1040 = vmatpush3.msra.mxu1 %v558_v17  ;;  %v406_v31 = vcombine.high %v384_v25, %v384_v25  ;;  %v446_v32 = vrot.slane %v384_v25, %v1323_v15  ;;  %v398_v33 = vrot.slane %v376_v24, %v1314_v9 }
  0x21   : > { %999 = vmatprep.subr.mxu0 %v557_v22  ;;  %1033 = vmatprep.subr.mxu1 %v557_v22  ;;  %v491_v34 = vadd.f32 %v414_v28, %v1334_v23  ;;  %v418_v35 = vrot.slane %v349_v29, %v1323_v15  ;;  %v422_v36 = vrot.slane %v357_v27, %v1323_v15  ;;  %p1138_p0 = pneg %p1137_p13 }
  0x22   : > { %1000 = vmatpush3.msra.mxu0 %v557_v22  ;;  %1041 = vmatpush3.msra.mxu1 %v557_v22  ;;  %v499_v37 = vadd.f32 %v446_v32, %v1334_v23  ;;  %v450_v38 = vrot.slane %v398_v33, %v1323_v15  ;;  %v454_v39 = vrot.slane %v406_v31, %v1323_v15 }
  0x23   : > { %1001 = vmatprep.subr.mxu0 %v556_v30  ;;  %1034 = vmatprep.subr.mxu1 %v556_v30  ;;  %1103 = vtanh.f32 %v491_v34  ;;  %v492_v40 = vadd.f32 %v418_v35, %v1334_v23  ;;  %v493_v41 = vadd.f32 %v422_v36, %v1334_v23  ;;  %v359_v42 = vcombine.high %v349_v29, %v349_v29  ;;  %p1145_p5 = pnand %p1144_p3, %p1138_p0 }
  0x24   : > { %1002 = vmatpush3.msra.mxu0 %v556_v30  ;;  %1042 = vmatpush3.msra.mxu1 %v556_v30  ;;  %1105 = vtanh.f32 %v499_v37  ;;  %v500_v43 = vadd.f32 %v450_v38, %v1334_v23  ;;  %v501_v44 = vadd.f32 %v454_v39, %v1334_v23  ;;  %v408_v45 = vcombine.high %v398_v33, %v398_v33 }
  0x25   : > { %1107 = vtanh.f32 %v492_v40  ;;  %v426_v46 = vrot.slane %v359_v42, %v1323_v15  ;;  %v328_v50 = vcombine.high %v326_v21, %v326_v21  ;;  %v377_v51 = vcombine.high %v375_v26, %v375_v26 }
  0x26   : > { %1109 = vtanh.f32 %v500_v43  ;;  %v458_v49 = vrot.slane %v408_v45, %v1323_v15  ;;  %v430_v53 = vrot.slane %v342_v47, %v1323_v15  ;;  %v462_v54 = vrot.slane %v391_v48, %v1323_v15 }
  0x27   : > { %1111 = vtanh.f32 %v493_v41  ;;  %v494_v52 = vadd.f32 %v426_v46, %v1334_v23  ;;  %v356_v56 = vrot.slane %v328_v50, %v1314_v9  ;;  %v405_v57 = vrot.slane %v377_v51, %v1314_v9 }
  0x28   : > { %1113 = vtanh.f32 %v501_v44  ;;  %v502_v55 = vadd.f32 %v458_v49, %v1334_v23  ;;  %v495_v58 = vadd.f32 %v430_v53, %v1334_v23  ;;  %v503_v59 = vadd.f32 %v462_v54, %v1334_v23  ;;  %v939_v44 = vld [vmem:[%s1494_s3] ss:$0 sm:$0xff] }
  0x29   : > { %1115 = vtanh.f32 %v494_v52  ;;  %v358_v60 = vcombine.high %v342_v47, %v342_v47  ;;  %v434_v61 = vrot.slane %v356_v56, %v1323_v15  ;;  %v466_v62 = vrot.slane %v405_v57, %v1323_v15 }
  0x2a   : > { %1117 = vtanh.f32 %v502_v55  ;;  %v407_v63 = vcombine.high %v391_v48, %v391_v48  ;;  %v360_v1 = vcombine.high %v356_v56, %v356_v56  ;;  %v409_v2 = vcombine.high %v405_v57, %v405_v57 }
  0x2b   : > { %1119 = vtanh.f32 %v495_v58  ;;  %v438_v0 = vrot.slane %v358_v60, %v1323_v15  ;;  %v496_v3 = vadd.f32 %v434_v61, %v1334_v23  ;;  %v504_v4 = vadd.f32 %v466_v62, %v1334_v23 }
  0x2c   : > { %1121 = vtanh.f32 %v503_v59  ;;  %v470_v5 = vrot.slane %v407_v63, %v1323_v15  ;;  %v442_v7 = vrot.slane %v360_v1, %v1323_v15  ;;  %v474_v8 = vrot.slane %v409_v2, %v1323_v15 }
  0x2d   : > { %v497_v6 = vadd.f32 %v438_v0, %v1334_v23  ;;  %1123 = vtanh.f32 %v496_v3 }
  0x2e   : > { %v505_v9 = vadd.f32 %v470_v5, %v1334_v23  ;;  %1125 = vtanh.f32 %v504_v4  ;;  %v498_v10 = vadd.f32 %v442_v7, %v1334_v23  ;;  %v506_v11 = vadd.f32 %v474_v8, %v1334_v23 }
  0x2f   : > { %1127 = vtanh.f32 %v497_v6 }
  0x30   : > { %v1104_v12 = vpop.eup %1103  ;;  %1129 = vtanh.f32 %v505_v9 }
  0x31   : > { %v1106_v13 = vpop.eup %1105  ;;  %524 = vst.msk [vmem:[#allocation2] sm:$0xff] %vm523_vm0, %v1104_v12  ;;  %1131 = vtanh.f32 %v498_v10 }
  0x32   : > { %v1108_v14 = vpop.eup %1107  ;;  %532 = vst.msk [vmem:[#allocation2 + $0x40] sm:$0xff] %vm523_vm0, %v1106_v13  ;;  %1133 = vtanh.f32 %v506_v11 }
  0x33   : > { %v1110_v15 = vpop.eup %1109  ;;  %525 = vst.msk [vmem:[#allocation2 + $0x8] sm:$0xff] %vm523_vm0, %v1108_v14 }
  0x34   : > { %v1112_v16 = vpop.eup %1111  ;;  %533 = vst.msk [vmem:[#allocation2 + $0x48] sm:$0xff] %vm523_vm0, %v1110_v15 }
  0x35   : > { %v1114_v17 = vpop.eup %1113  ;;  %526 = vst.msk [vmem:[#allocation2 + $0x10] sm:$0xff] %vm523_vm0, %v1112_v16 }
  0x36   : > { %v1116_v18 = vpop.eup %1115  ;;  %534 = vst.msk [vmem:[#allocation2 + $0x50] sm:$0xff] %vm523_vm0, %v1114_v17 }
  0x37   : > { %v1118_v19 = vpop.eup %1117  ;;  %527 = vst.msk [vmem:[#allocation2 + $0x18] sm:$0xff] %vm523_vm0, %v1116_v18 }
  0x38   : > { %v1120_v20 = vpop.eup %1119  ;;  %v540_v21 = vld [vmem:[#allocation2] sm:$0xff]  ;;  %535 = vst.msk [vmem:[#allocation2 + $0x58] sm:$0xff] %vm523_vm0, %v1118_v19 }
  0x39   : > { %v1122_v22 = vpop.eup %1121  ;;  %1003 = vmatprep.mubr.msk.f32.mxu0 %vm523_vm0, %v540_v21  ;;  %v548_v23 = vld [vmem:[#allocation2 + $0x40] sm:$0xff]  ;;  %528 = vst.msk [vmem:[#allocation2 + $0x20] sm:$0xff] %vm523_vm0, %v1120_v20 }
  0x3a   : > { %1015 = vmatprep.mubr.msk.f32.mxu1 %vm523_vm0, %v548_v23  ;;  %v541_v24 = vld [vmem:[#allocation2 + $0x8] sm:$0xff]  ;;  %536 = vst.msk [vmem:[#allocation2 + $0x60] sm:$0xff] %vm523_vm0, %v1122_v22  ;;  %v1124_v25 = vpop.eup %1123 }
  0x3b   : > { %1004 = vmatmul.mubr.msk.f32.vlgmr.msra.gmra.mxu0 %vm523_vm0, %v541_v24  ;;  %v549_v26 = vld [vmem:[#allocation2 + $0x48] sm:$0xff]  ;;  %v1126_v27 = vpop.eup %1125  ;;  %529 = vst.msk [vmem:[#allocation2 + $0x28] sm:$0xff] %vm523_vm0, %v1124_v25 }
  0x3c   : > { %1016 = vmatmul.mubr.msk.f32.vlgmr.msra.gmra.mxu1 %vm523_vm0, %v549_v26  ;;  %v542_v28 = vld [vmem:[#allocation2 + $0x10] sm:$0xff]  ;;  %v1128_v29 = vpop.eup %1127  ;;  %537 = vst.msk [vmem:[#allocation2 + $0x68] sm:$0xff] %vm523_vm0, %v1126_v27 }
  0x3d   : > { %1006 = vmatprep.mubr.msk.f32.mxu0 %vm523_vm0, %v542_v28  ;;  %v550_v30 = vld [vmem:[#allocation2 + $0x50] sm:$0xff]  ;;  %v1130_v31 = vpop.eup %1129  ;;  %530 = vst.msk [vmem:[#allocation2 + $0x30] sm:$0xff] %vm523_vm0, %v1128_v29 }
  0x3e   : > { %1018 = vmatprep.mubr.msk.f32.mxu1 %vm523_vm0, %v550_v30  ;;  %v543_v32 = vld [vmem:[#allocation2 + $0x18] sm:$0xff]  ;;  %v1132_v33 = vpop.eup %1131  ;;  %538 = vst.msk [vmem:[#allocation2 + $0x70] sm:$0xff] %vm523_vm0, %v1130_v31 }
  0x3f   : > { %1007 = vmatmul.mubr.msk.f32.gmra.mxu0 %vm523_vm0, %v543_v32  ;;  %v551_v34 = vld [vmem:[#allocation2 + $0x58] sm:$0xff]  ;;  %v1134_v35 = vpop.eup %1133  ;;  %531 = vst.msk [vmem:[#allocation2 + $0x38] sm:$0xff] %vm523_vm0, %v1132_v33 }
  0x40   : > { %1019 = vmatmul.mubr.msk.f32.gmra.mxu1 %vm523_vm0, %v551_v34  ;;  %v544_v36 = vld [vmem:[#allocation2 + $0x20] sm:$0xff]  ;;  %539 = vst.msk [vmem:[#allocation2 + $0x78] sm:$0xff] %vm523_vm0, %v1134_v35 }
  0x41   : > { %1009 = vmatprep.mubr.msk.f32.mxu0 %vm523_vm0, %v544_v36  ;;  %v552_v37 = vld [vmem:[#allocation2 + $0x60] sm:$0xff] }
  0x42   : > { %1021 = vmatprep.mubr.msk.f32.mxu1 %vm523_vm0, %v552_v37  ;;  %v545_v38 = vld [vmem:[#allocation2 + $0x28] sm:$0xff] }
  0x43   : > { %1010 = vmatmul.mubr.msk.f32.gmra.mxu0 %vm523_vm0, %v545_v38  ;;  %v553_v39 = vld [vmem:[#allocation2 + $0x68] sm:$0xff] }
  0x44   : > { %1022 = vmatmul.mubr.msk.f32.gmra.mxu1 %vm523_vm0, %v553_v39  ;;  %v546_v40 = vld [vmem:[#allocation2 + $0x30] sm:$0xff] }
  0x45   : > { %1012 = vmatprep.mubr.msk.f32.mxu0 %vm523_vm0, %v546_v40  ;;  %v554_v41 = vld [vmem:[#allocation2 + $0x70] sm:$0xff] }
  0x46   : > { %1024 = vmatprep.mubr.msk.f32.mxu1 %vm523_vm0, %v554_v41  ;;  %v547_v42 = vld [vmem:[#allocation2 + $0x38] sm:$0xff] }
  0x47   : > { %1013 = vmatmul.mubr.msk.f32.gmra.mxu0 %vm523_vm0, %v547_v42  ;;  %v555_v43 = vld [vmem:[#allocation2 + $0x78] sm:$0xff] }
  0x48   : > { %1025 = vmatmul.mubr.msk.f32.gmra.mxu1 %vm523_vm0, %v555_v43 }
  0xfb   : > { %v1005_v45 = vpop.f32.mrf.mxu0 }
  0xfc   : > { %v692_v46 = vadd.f32 %v1005_v45, %v939_v44  ;;  %v1017_v47 = vpop.f32.mrf.mxu1 }
  0xfd   : > { %v732_v48 = vadd.f32 %v1017_v47, %v939_v44  ;;  %v686_v49 = vpop.f32.mrf.mxu0 }
  0xfe   : > { %766 = vst [vmem:[%s1417_s22 + $0x8] sm:$0xff] %v692_v46  ;;  %v687_v50 = vadd.f32 %v939_v44, %v686_v49  ;;  %v726_v51 = vpop.f32.mrf.mxu1 }
  0xff   : > { %774 = vst [vmem:[%s1417_s22 + $0x48] sm:$0xff] %v732_v48  ;;  %v727_v52 = vadd.f32 %v939_v44, %v726_v51  ;;  %v1008_v53 = vpop.f32.mrf.mxu0 }
 0x100   : > { %765 = vst [vmem:[%s1417_s22] sm:$0xff] %v687_v50  ;;  %v702_v54 = vadd.f32 %v1008_v53, %v939_v44  ;;  %v1020_v55 = vpop.f32.mrf.mxu1 }
 0x101   : > { %773 = vst [vmem:[%s1417_s22 + $0x40] sm:$0xff] %v727_v52  ;;  %v742_v56 = vadd.f32 %v1020_v55, %v939_v44  ;;  %v696_v57 = vpop.f32.mrf.mxu0 }
 0x102   : > { %768 = vst [vmem:[%s1417_s22 + $0x18] sm:$0xff] %v702_v54  ;;  %v697_v58 = vadd.f32 %v939_v44, %v696_v57  ;;  %v736_v59 = vpop.f32.mrf.mxu1 }
 0x103   : > { %776 = vst [vmem:[%s1417_s22 + $0x58] sm:$0xff] %v742_v56  ;;  %v737_v60 = vadd.f32 %v939_v44, %v736_v59  ;;  %v1011_v61 = vpop.f32.mrf.mxu0 }
 0x104   : > { %767 = vst [vmem:[%s1417_s22 + $0x10] sm:$0xff] %v697_v58  ;;  %v712_v62 = vadd.f32 %v1011_v61, %v939_v44  ;;  %v1023_v63 = vpop.f32.mrf.mxu1 }
 0x105   : > { %775 = vst [vmem:[%s1417_s22 + $0x50] sm:$0xff] %v737_v60  ;;  %v752_v0 = vadd.f32 %v1023_v63, %v939_v44  ;;  %v706_v1 = vpop.f32.mrf.mxu0 }
 0x106   : > { %770 = vst [vmem:[%s1417_s22 + $0x28] sm:$0xff] %v712_v62  ;;  %v707_v2 = vadd.f32 %v939_v44, %v706_v1  ;;  %v746_v3 = vpop.f32.mrf.mxu1 }
 0x107   : > { %778 = vst [vmem:[%s1417_s22 + $0x68] sm:$0xff] %v752_v0  ;;  %v747_v4 = vadd.f32 %v939_v44, %v746_v3  ;;  %v1014_v5 = vpop.f32.mrf.mxu0 }
 0x108   : > { %769 = vst [vmem:[%s1417_s22 + $0x20] sm:$0xff] %v707_v2  ;;  %v722_v6 = vadd.f32 %v1014_v5, %v939_v44  ;;  %v1026_v7 = vpop.f32.mrf.mxu1 }
 0x109   : > { %777 = vst [vmem:[%s1417_s22 + $0x60] sm:$0xff] %v747_v4  ;;  %v762_v8 = vadd.f32 %v1026_v7, %v939_v44  ;;  %v716_v9 = vpop.f32.mrf.mxu0 }
 0x10a   : > { %772 = vst [vmem:[%s1417_s22 + $0x38] sm:$0xff] %v722_v6  ;;  %v717_v10 = vadd.f32 %v939_v44, %v716_v9  ;;  %v756_v11 = vpop.f32.mrf.mxu1 }
 0x10b   : > { %780 = vst [vmem:[%s1417_s22 + $0x78] sm:$0xff] %v762_v8  ;;  %v757_v12 = vadd.f32 %v939_v44, %v756_v11 }
 0x10c   : > { %771 = vst [vmem:[%s1417_s22 + $0x30] sm:$0xff] %v717_v10 }
 0x10d   : > { %779 = vst [vmem:[%s1417_s22 + $0x70] sm:$0xff] %v757_v12 }
 0x10e   : > { %1148 = shalt.err (!%p1145_p5)
}
 0x10f   : > { %s1149_s10 = scalar_lea.hbm %s1437_s5, 2048  ;;  %s1153_s13 = scalar_lea.hbm %s1495_s4, 4096 }
 0x110   : > { %p1150_p6 = scmp.ne.s32.totalorder %s1437_s5, %s1149_s10  ;;  %p1154_p10 = scmp.lt.s32.totalorder %s1437_s5, %s1495_s4 }
 0x111   : > { %p1155_p11 = scmp.lt.s32.totalorder %s1153_s13, %s1149_s10 }
 0x112   : > { %p1151_p7 = pnand %p1150_p6, %p1282_p4 }
 0x113   : > { %p1156_p12 = por %p1155_p11, %p1154_p10 }
 0x114   : > { %p1152_p9 = pneg %p1151_p7 }
 0x116   : > { %p1157_p13 = pnand %p1156_p12, %p1152_p9 }
 0x118   : > { %1160 = shalt.err (!%p1157_p13)
}
 0x119   : > { %s1215_s22 = smov 128   ;;  %s1216_s24 = smov 8  }
 0x11a   : > { %1043 = dma.vmem_to_hbm [thread:$0]  (%p1282_p4), %s1439_s26, 2048, %s1437_s5, %s1446_s18, %s1215_s22, %s1215_s22, %s1216_s24  }
 0x11b PF: > { %p1049_p0 = scmp.ge.s32.totalorder %s1211_s20, 2  ;;  %s814_s29 = sand.u32 1, %s1191_s15  }
 0x11c   : > { %s815_s30 = scalar_lea.sflag [#allocation4], %s814_s29 }
 0x11d   : > { %p1046_p1 = pnand %p1049_p0, %p1289_p8 }
 0x11f   : > { %p1047_p2 = pneg %p1046_p1 }
 0x121   : > { %1186 = dma.done.wait (%p1047_p2), %s815_s30, 2048  }
 0x122   : > { %1188 = vsyncadd (%p1047_p2), %s815_s30, 4294965248  ;;  %s17_s20 = sadd.s32 1, %s1211_s20   ;;  %s1498_s15 = smov %s1195_s16 }
 0x123   : > { %p14_p3 = scmp.ge.s32.totalorder %s17_s20, 4   ;;  %s1499_s16 = smov %s1199_s17 }
 0x124   : > { %s1500_s17 = smov %s1295_s28  ;;  %s1501_s18 = smov %s1207_s19 }
 0x125   : > { %s1502_s19 = smov %s1504_s23  ;;  %16 = sbr.rel (!%p14_p3) target bundleno = 4 (0x4), region = 84 }
 0x12a   :  { %820 = vsyncpa [#allocation4], 1 }
 0x12b   :  { %822 = vsyncpa [#allocation4 + $0x1], 1 }

</bundles_post_ra>
